<compile_context>
chip_gen: v7x
topology: tpu7x:2x2x1
jax: 0.10.0
libtpu: 0.0.40
codegen_flags: <defaults>
</compile_context>

<pallas_src>
import functools

import jax
import jax.numpy as jnp
from jax.experimental import pallas as pl
from jax.experimental.pallas import tpu as pltpu


def _round_up(x, m):
    return (x + m - 1) // m * m


def _vmem_cap_bytes():
    """Physical VMEM on this chip (falls back to the v7x 64 MiB per-TC cap)."""
    try:
        return int(pltpu.get_tpu_info().vmem_capacity_bytes)
    except Exception:
        return 64 << 20


# ---------------------------------------------------------------------------
# Kernels
# ---------------------------------------------------------------------------

def _mlp_resident_kernel(x_ref, w_ref, b_ref, o_ref, *, nlayers):
    """Full layer stack resident in VMEM; one (tm, nhid) activation tile.

    x_ref: (tm, nhid)        activation tile
    w_ref: (L, nhid, nhid)   pre-transposed weights (in x out), bf16 (or f32)
    b_ref: (L, 1, nhid)      biases, f32
    o_ref: (tm, nhid)        output tile
    """
    h = x_ref[...].astype(w_ref.dtype)           # cast once; MXU does bf16xbf16 -> f32
    for l in range(nlayers):                     # static loop: L is compile-time
        y = jnp.dot(h, w_ref[l], preferred_element_type=jnp.float32)
        y = y + b_ref[l]
        if l < nlayers - 1:
            # dropout(training=False) == identity; ReLU fused. Carry the
            # inter-layer activation in the narrow weight dtype to halve the
            # live footprint / spill-store traffic (cast happens before the
            # next matmul anyway).
            h = jnp.maximum(y, 0.0).astype(w_ref.dtype)
        else:
            h = y                                # last layer stays f32 for the store
    o_ref[...] = h.astype(o_ref.dtype)


def _mlp_stream_kernel(x_ref, w_ref, b_ref, o_ref, h_ref):
    """Layer-streaming variant: grid=(batch_tiles, L); one layer weight block
    resident (double-buffered) at a time, activation held in VMEM scratch.

    x_ref: (tm, nhid)      w_ref: (1, nhid, nhid)      b_ref: (1, 1, nhid)
    o_ref: (tm, nhid)      h_ref: (tm, nhid) scratch (weight dtype)
    """
    l = pl.program_id(1)
    n_l = pl.num_programs(1)

    @pl.when(l == 0)
    def _():
        h_ref[...] = x_ref[...].astype(h_ref.dtype)

    y = jnp.dot(h_ref[...], w_ref[0], preferred_element_type=jnp.float32) + b_ref[0]

    @pl.when(l < n_l - 1)
    def _():
        h_ref[...] = jnp.maximum(y, 0.0).astype(h_ref.dtype)

    @pl.when(l == n_l - 1)
    def _():
        o_ref[...] = y.astype(o_ref.dtype)


# ---------------------------------------------------------------------------
# pallas_call builders
# ---------------------------------------------------------------------------

def _pick_tile_m(n, tile_m):
    """Batch tile: multiple of 8, as big as tile_m, and >=2 grid steps when
    there is enough work (v7x has 2 TensorCores sharing the 'parallel' axis)."""
    n8 = _round_up(max(int(n), 1), 8)
    tm = min(int(tile_m), n8)
    if n8 >= 256 and pl.cdiv(n8, tm) < 2:
        tm = _round_up(pl.cdiv(n8, 2), 8)
    return tm


def _resident_call(x, w_stack, b_stack, *, tm, vmem_limit, cost, single_buffer_resident):
    n, nhid = x.shape
    L = w_stack.shape[0]
    # The weight / bias stacks are grid-invariant (index_map always (0,0,0)),
    # so double-buffering them only wastes VMEM: request a single buffer.
    resident_kwargs = (
        dict(pipeline_mode=pl.Buffered(1)) if single_buffer_resident else {})
    kernel = functools.partial(_mlp_resident_kernel, nlayers=L)
    return pl.pallas_call(
        kernel,
        out_shape=jax.ShapeDtypeStruct((n, nhid), x.dtype),
        grid_spec=pltpu.PrefetchScalarGridSpec(
            num_scalar_prefetch=0,
            grid=(pl.cdiv(n, tm),),
            in_specs=[
                pl.BlockSpec((tm, nhid), lambda i: (i, 0)),                 # activation tile
                pl.BlockSpec((L, nhid, nhid), lambda i: (0, 0, 0),
                             **resident_kwargs),                            # resident weights
                pl.BlockSpec((L, 1, nhid), lambda i: (0, 0, 0),
                             **resident_kwargs),                            # resident biases
            ],
            out_specs=pl.BlockSpec((tm, nhid), lambda i: (i, 0)),
        ),
        compiler_params=pltpu.CompilerParams(
            dimension_semantics=("parallel",),     # batch tiles shard across TCs
            vmem_limit_bytes=vmem_limit,
        ),
        cost_estimate=cost,
    )(x, w_stack, b_stack)


def _stream_call(x, w_stack, b_stack, *, tm, vmem_limit, cost):
    n, nhid = x.shape
    L = w_stack.shape[0]
    return pl.pallas_call(
        _mlp_stream_kernel,
        out_shape=jax.ShapeDtypeStruct((n, nhid), x.dtype),
        grid_spec=pltpu.PrefetchScalarGridSpec(
            num_scalar_prefetch=0,
            grid=(pl.cdiv(n, tm), L),
            in_specs=[
                pl.BlockSpec((tm, nhid), lambda i, l: (i, 0)),        # activation tile (invariant in l)
                pl.BlockSpec((1, nhid, nhid), lambda i, l: (l, 0, 0)),  # layer-l weights (double-buffered)
                pl.BlockSpec((1, 1, nhid), lambda i, l: (l, 0, 0)),     # layer-l bias
            ],
            out_specs=pl.BlockSpec((tm, nhid), lambda i, l: (i, 0)),
            scratch_shapes=[pltpu.VMEM((tm, nhid), w_stack.dtype)],   # inter-layer activation
        ),
        compiler_params=pltpu.CompilerParams(
            dimension_semantics=("parallel", "arbitrary"),
            vmem_limit_bytes=vmem_limit,
        ),
        cost_estimate=cost,
    )(x, w_stack, b_stack)


# ---------------------------------------------------------------------------
# Public forward
# ---------------------------------------------------------------------------

def differentiator_forward(x, w_stack, b_stack, *, tile_m=512, force_stream=False):
    """Eval-mode forward of `differentiator` as a single fused Pallas kernel.

    x:       [N, nhid]
    w_stack: [L, nhid, nhid]  (each layer already transposed to in x out)
    b_stack: [L, 1, nhid]     float32
    """
    n, nhid = x.shape
    L = w_stack.shape[0]
    w_isz = w_stack.dtype.itemsize
    x_isz = x.dtype.itemsize

    tm = _pick_tile_m(n, tile_m)

    cost = pl.CostEstimate(
        flops=2 * n * nhid * nhid * L,
        transcendentals=0,
        bytes_accessed=(x.size * x_isz
                        + w_stack.size * w_isz
                        + b_stack.size * b_stack.dtype.itemsize
                        + n * nhid * x_isz),
    )

    vmem_cap = _vmem_cap_bytes()

    # Resident-weight scheme only while the single-buffered stack stays well
    # under scoped VMEM (v7x: 64 MiB physical per TC); otherwise stream layers.
    resident_w_bytes = L * nhid * nhid * w_isz
    use_stream = force_stream or resident_w_bytes > (20 << 20)

    if use_stream:
        need = (2 * nhid * nhid * w_isz            # double-buffered per-layer weights
                + 2 * nhid * 4                     # double-buffered per-layer bias
                + 2 * tm * nhid * 2 * x_isz        # act in/out double buffers
                + tm * nhid * w_isz                # resident inter-layer activation
                + 4 * tm * nhid * 4)               # f32 working set
        vmem_limit = int(min(max(need * 1.25, 32 << 20), 0.9 * vmem_cap))
        return _stream_call(x, w_stack, b_stack, tm=tm, vmem_limit=vmem_limit, cost=cost)

    # Size the limit generously enough to also cover the double-buffered
    # fallback (older JAX without BlockSpec.pipeline_mode).
    need = (2 * resident_w_bytes
            + 2 * L * nhid * 4
            + 2 * tm * nhid * 2 * x_isz
            + 4 * tm * nhid * 4)
    vmem_limit = int(min(max(need * 1.25, 32 << 20), 0.9 * vmem_cap))
    try:
        return _resident_call(x, w_stack, b_stack, tm=tm, vmem_limit=vmem_limit,
                              cost=cost, single_buffer_resident=True)
    except Exception:
        # Graceful fallback if pl.Buffered(1) / pipeline_mode is unsupported.
        return _resident_call(x, w_stack, b_stack, tm=tm, vmem_limit=vmem_limit,
                              cost=cost, single_buffer_resident=False)


# ---------------------------------------------------------------------------
# Params / reference
# ---------------------------------------------------------------------------

def init_differentiator_params(key, nhid, nlayers, *, weight_dtype=jnp.bfloat16):
    """nn.Linear.reset_parameters-style init (uniform +/- 1/sqrt(fan_in)).

    Weights are pre-transposed to [in, out], cast to `weight_dtype`, and
    stacked so the forward path never transposes or re-casts.
    """
    bound = 1.0 / (nhid ** 0.5)
    ws, bs = [], []
    for _ in range(nlayers):
        key, kw, kb = jax.random.split(key, 3)
        w = jax.random.uniform(kw, (nhid, nhid), jnp.float32, -bound, bound)  # [out, in]
        b = jax.random.uniform(kb, (nhid,), jnp.float32, -bound, bound)
        ws.append(w.T.astype(weight_dtype))                  # store W^T = [in, out]
        bs.append(b.reshape(1, nhid).astype(jnp.float32))
    return jnp.stack(ws), jnp.stack(bs)


def reference_forward(x, w_stack, b_stack):
    """Plain-JAX reference mirroring the kernel's precision choices."""
    L = w_stack.shape[0]
    h = x.astype(w_stack.dtype)
    for l in range(L):
        y = jnp.dot(h, w_stack[l], preferred_element_type=jnp.float32) + b_stack[l]
        if l < L - 1:
            h = jnp.maximum(y, 0.0).astype(w_stack.dtype)
        else:
            h = y
    return h.astype(x.dtype)


if __name__ == "__main__":
    key = jax.random.PRNGKey(0)
    nhid = 128
    batch = 20  # deliberately NOT a multiple of 8: exercises the ragged last-block path

    k_x, k_p1, k_p2 = jax.random.split(key, 3)
    x = jax.random.normal(k_x, (batch, nhid), jnp.float32)

    # Case 1: default nlayer2=1 (single Linear, no ReLU).
    w1, b1 = init_differentiator_params(k_p1, nhid, nlayers=1)
    y1 = differentiator_forward(x, w1, b1)
    jax.block_until_ready(y1)
    ref1 = reference_forward(x, w1, b1)
    assert y1.shape == (batch, nhid)
    assert jnp.allclose(y1, ref1, atol=2e-2, rtol=2e-2), "nlayers=1 mismatch"

    # Case 2: nlayer2=3 -> fused dropout(eval)/ReLU between layers (resident path).
    w3, b3 = init_differentiator_params(k_p2, nhid, nlayers=3)
    y3 = differentiator_forward(x, w3, b3)
    jax.block_until_ready(y3)
    ref3 = reference_forward(x, w3, b3)
    assert y3.shape == (batch, nhid)
    assert jnp.allclose(y3, ref3, atol=2e-2, rtol=2e-2), "nlayers=3 mismatch"

    # Case 3: same problem forced through the layer-streaming scheme (the
    # big-nhid / v7x path) as a small-shape smoke test.
    y3s = differentiator_forward(x, w3, b3, force_stream=True)
    jax.block_until_ready(y3s)
    assert y3s.shape == (batch, nhid)
    assert jnp.allclose(y3s, ref3, atol=2e-2, rtol=2e-2), "stream path mismatch"

    print("KERNEL_OK")
</pallas_src>

<mosaic_0001>
module attributes {stable_mosaic.version = 11 : i64} {
  func.func @_mlp_resident_kernel(%arg0: i32, %arg1: memref<24x128xf32, #tpu.memory_space<vmem>>, %arg2: memref<1x128x128xbf16, #tpu.memory_space<vmem>>, %arg3: memref<1x1x128xf32, #tpu.memory_space<vmem>>, %arg4: memref<24x128xf32, #tpu.memory_space<vmem>>) attributes {dimension_semantics = [#tpu.dimension_semantics<parallel>], iteration_bounds = array<i64: 1>, scalar_prefetch = 0 : i64, scratch_operands = 0 : i64, tpu.core_type = #tpu.core_type<tc>, window_params = [{transform_indices = @transform_0, window_bounds = array<i64: 24, 128>}, {pipeline_mode = #tpu.pipeline_mode<synchronous>, transform_indices = @transform_1, window_bounds = array<i64: 1, 128, 128>}, {pipeline_mode = #tpu.pipeline_mode<synchronous>, transform_indices = @transform_2, window_bounds = array<i64: 1, 1, 128>}, {transform_indices = @transform_3, window_bounds = array<i64: 24, 128>}]} {
    %c0 = arith.constant 0 : index
    %c0_0 = arith.constant 0 : index
    %0 = vector.load %arg1[%c0, %c0_0] : memref<24x128xf32, #tpu.memory_space<vmem>>, vector<24x128xf32>
    %1 = arith.truncf %0 : vector<24x128xf32> to vector<24x128xbf16>
    %c0_1 = arith.constant 0 : index
    %c0_2 = arith.constant 0 : index
    %c0_3 = arith.constant 0 : index
    %2 = vector.load %arg2[%c0_1, %c0_2, %c0_3] : memref<1x128x128xbf16, #tpu.memory_space<vmem>>, vector<1x128x128xbf16>
    %3 = vector.shape_cast %2 : vector<1x128x128xbf16> to vector<128x128xbf16>
    %cst = arith.constant dense<0.000000e+00> : vector<24x128xf32>
    %4 = tpu.matmul %1, %3, %cst {dimension_numbers = #tpu.dot_dimension_numbers<[1], [0], [0], [1], [0, 0, 1, 1], [], []>} : vector<24x128xbf16>, vector<128x128xbf16>, vector<24x128xf32> -> vector<24x128xf32>
    %c0_4 = arith.constant 0 : index
    %c0_5 = arith.constant 0 : index
    %c0_6 = arith.constant 0 : index
    %5 = vector.load %arg3[%c0_4, %c0_5, %c0_6] : memref<1x1x128xf32, #tpu.memory_space<vmem>>, vector<1x1x128xf32>
    %6 = vector.shape_cast %5 : vector<1x1x128xf32> to vector<1x128xf32>
    %7 = vector.broadcast %6 : vector<1x128xf32> to vector<24x128xf32>
    %8 = arith.addf %4, %7 : vector<24x128xf32>
    %c0_7 = arith.constant 0 : index
    %c0_8 = arith.constant 0 : index
    %9 = vector.load %arg4[%c0_7, %c0_8] : memref<24x128xf32, #tpu.memory_space<vmem>>, vector<24x128xf32>
    tpu.vector_store %arg4[%c0_7, %c0_8], %8 {strides = array<i32>} : memref<24x128xf32, #tpu.memory_space<vmem>>, vector<24x128xf32>,
    return
  }
  func.func @transform_0(%arg0: i32) -> (i32, i32) {
    %c0_i32 = arith.constant 0 : i32
    %c0_i32_0 = arith.constant 0 : i32
    return %arg0, %c0_i32 : i32, i32
  }
  func.func @transform_1(%arg0: i32) -> (i32, i32, i32) {
    %c0_i32 = arith.constant 0 : i32
    %c0_i32_0 = arith.constant 0 : i32
    %c0_i32_1 = arith.constant 0 : i32
    %c0_i32_2 = arith.constant 0 : i32
    return %c0_i32, %c0_i32_0, %c0_i32_1 : i32, i32, i32
  }
  func.func @transform_2(%arg0: i32) -> (i32, i32, i32) {
    %c0_i32 = arith.constant 0 : i32
    %c0_i32_0 = arith.constant 0 : i32
    %c0_i32_1 = arith.constant 0 : i32
    %c0_i32_2 = arith.constant 0 : i32
    return %c0_i32, %c0_i32_0, %c0_i32_1 : i32, i32, i32
  }
  func.func @transform_3(%arg0: i32) -> (i32, i32) {
    %c0_i32 = arith.constant 0 : i32
    %c0_i32_0 = arith.constant 0 : i32
    return %arg0, %c0_i32 : i32, i32
  }
}

module attributes {stable_mosaic.version = 11 : i64} {
  func.func @_mlp_resident_kernel(%arg0: i32, %arg1: memref<24x128xf32, #tpu.memory_space<vmem>>, %arg2: memref<1x128x128xbf16, #tpu.memory_space<vmem>>, %arg3: memref<1x1x128xf32, #tpu.memory_space<vmem>>, %arg4: memref<24x128xf32, #tpu.memory_space<vmem>>) attributes {dimension_semantics = [#tpu.dimension_semantics<parallel>], iteration_bounds = array<i64: 1>, scalar_prefetch = 0 : i64, scratch_operands = 0 : i64, tpu.core_type = #tpu.core_type<tc>, window_params = [{transform_indices = @transform_0, window_bounds = array<i64: 24, 128>}, {pipeline_mode = #tpu.pipeline_mode<synchronous>, transform_indices = @transform_1, window_bounds = array<i64: 1, 128, 128>}, {pipeline_mode = #tpu.pipeline_mode<synchronous>, transform_indices = @transform_2, window_bounds = array<i64: 1, 1, 128>}, {transform_indices = @transform_3, window_bounds = array<i64: 24, 128>}]} {
    %c0 = arith.constant 0 : index
    %c0_0 = arith.constant 0 : index
    %0 = vector.load %arg1[%c0, %c0_0] : memref<24x128xf32, #tpu.memory_space<vmem>>, vector<24x128xf32>
    %1 = arith.truncf %0 : vector<24x128xf32> to vector<24x128xbf16>
    %c0_1 = arith.constant 0 : index
    %c0_2 = arith.constant 0 : index
    %c0_3 = arith.constant 0 : index
    %2 = vector.load %arg2[%c0_1, %c0_2, %c0_3] : memref<1x128x128xbf16, #tpu.memory_space<vmem>>, vector<1x128x128xbf16>
    %3 = vector.shape_cast %2 : vector<1x128x128xbf16> to vector<128x128xbf16>
    %cst = arith.constant dense<0.000000e+00> : vector<24x128xf32>
    %4 = tpu.matmul %1, %3, %cst {dimension_numbers = #tpu.dot_dimension_numbers<[1], [0], [0], [1], [0, 0, 1, 1], [], []>} : vector<24x128xbf16>, vector<128x128xbf16>, vector<24x128xf32> -> vector<24x128xf32>
    %c0_4 = arith.constant 0 : index
    %c0_5 = arith.constant 0 : index
    %c0_6 = arith.constant 0 : index
    %5 = vector.load %arg3[%c0_4, %c0_5, %c0_6] : memref<1x1x128xf32, #tpu.memory_space<vmem>>, vector<1x1x128xf32>
    %6 = vector.shape_cast %5 : vector<1x1x128xf32> to vector<1x128xf32>
    %7 = vector.broadcast %6 : vector<1x128xf32> to vector<24x128xf32>
    %8 = arith.addf %4, %7 : vector<24x128xf32>
    %c0_7 = arith.constant 0 : index
    %c0_8 = arith.constant 0 : index
    %9 = vector.load %arg4[%c0_7, %c0_8] : memref<24x128xf32, #tpu.memory_space<vmem>>, vector<24x128xf32>
    tpu.vector_store %arg4[%c0_7, %c0_8], %8 {strides = array<i32>} : memref<24x128xf32, #tpu.memory_space<vmem>>, vector<24x128xf32>,
    return
  }
  func.func @transform_0(%arg0: i32) -> (i32, i32) {
    %c0_i32 = arith.constant 0 : i32
    %c0_i32_0 = arith.constant 0 : i32
    return %arg0, %c0_i32 : i32, i32
  }
  func.func @transform_1(%arg0: i32) -> (i32, i32, i32) {
    %c0_i32 = arith.constant 0 : i32
    %c0_i32_0 = arith.constant 0 : i32
    %c0_i32_1 = arith.constant 0 : i32
    %c0_i32_2 = arith.constant 0 : i32
    return %c0_i32, %c0_i32_0, %c0_i32_1 : i32, i32, i32
  }
  func.func @transform_2(%arg0: i32) -> (i32, i32, i32) {
    %c0_i32 = arith.constant 0 : i32
    %c0_i32_0 = arith.constant 0 : i32
    %c0_i32_1 = arith.constant 0 : i32
    %c0_i32_2 = arith.constant 0 : i32
    return %c0_i32, %c0_i32_0, %c0_i32_1 : i32, i32, i32
  }
  func.func @transform_3(%arg0: i32) -> (i32, i32) {
    %c0_i32 = arith.constant 0 : i32
    %c0_i32_0 = arith.constant 0 : i32
    return %arg0, %c0_i32 : i32, i32
  }
}

</mosaic_0001>

<bundles_post_ra>
// kernel: tpu_custom_call.1
= control target key start
LH: loop header
LB: loop body
LE: loop exit
PB: predicated region body
PF: predicated region fallthrough
CT: control target
= control target key end

     0   :  { %8 = vsyncpa [#allocation3], 0  ;;  %s387_s0 = inlined_call_operand.hbm [shape: f32[20,128], index: 0, kind: input, shape index: {}]   ;;  %s388_s1 = inlined_call_operand.hbm [shape: bf16[1,128,128], index: 1, kind: input, shape index: {}]   ;;  %s389_s2 = inlined_call_operand.vmem [shape: f32[1,1,128], index: 2, kind: input, shape index: {}]   ;;  %s390_s3 = inlined_call_operand.hbm [shape: f32[20,128], index: 3, kind: output, shape index: {}]  }
   0x1   :  { %9 = vsyncpa [#allocation6], 0 }
   0x2   :  { %10 = vsyncpa [#allocation4], 0  ;;  %s315_s12 = smov [#allocation2]   ;;  %s243_s16 = scalar_lea.hbm %s387_s0, 384 }
   0x3   :  { %s16_s13 = sshll.u32 %s315_s12, 4  ;;  %p244_p0 = scmp.ne.s32.totalorder %s387_s0, %s243_s16  ;;  %s17_s13 = int_to_ptr.vmem [resolvable:$true] %s16_s13 }
   0x4   :  { %p247_p1 = scmp.lt.u32.totalorder %s243_s16, %s387_s0 }
   0x6   :  { %p249_p2 = pnand %p247_p1, %p244_p0 }
   0x8   :  { %252 = shalt.err (!%p249_p2)
}
   0x9   :  { %s253_s21 = scalar_lea.vmem %s17_s13, 384  ;;  %p258_p4 = scmp.lt.s32.totalorder %s17_s13, %s17_s13 }
   0xa   :  { %p254_p3 = scmp.ne.s32.totalorder %s17_s13, %s253_s21  ;;  %p259_p5 = scmp.lt.s32.totalorder %s253_s21, %s253_s21 }
   0xc   :  { %p260_p6 = por %p259_p5, %p258_p4 }
   0xe   :  { %p261_p7 = pnand %p260_p6, %p254_p3 }
  0x10   :  { %264 = shalt.err (!%p261_p7)
}
  0x11   :  { %s316_s22 = smov 128   ;;  %s317_s23 = smov 8  }
  0x12   :  { %22 = dma.hbm_to_vmem [thread:$0]  %s387_s0, 384, %s17_s13, [#allocation3], %s316_s22, %s316_s22, %s317_s23  }
  0x13   :  { %s318_s26 = smov [#allocation5]   ;;  %s265_s30 = scalar_lea.hbm %s388_s1, 1024 }
  0x14   :  { %s28_s27 = sshll.u32 %s318_s26, 4  ;;  %p266_p8 = scmp.ne.s32.totalorder %s388_s1, %s265_s30  ;;  %s29_s27 = int_to_ptr.vmem [resolvable:$true] %s28_s27 }
  0x15   :  { %p269_p9 = scmp.lt.u32.totalorder %s265_s30, %s388_s1 }
  0x17   :  { %p271_p10 = pnand %p269_p9, %p266_p8 }
  0x19   :  { %274 = shalt.err (!%p271_p10)
}
  0x1a   :  { %s275_s8 = scalar_lea.vmem %s29_s27, 1024  ;;  %p280_p12 = scmp.lt.s32.totalorder %s29_s27, %s29_s27 }
  0x1b   :  { %p276_p11 = scmp.ne.s32.totalorder %s29_s27, %s275_s8  ;;  %p281_p13 = scmp.lt.s32.totalorder %s275_s8, %s275_s8 }
  0x1d   :  { %p282_p0 = por %p281_p13, %p280_p12 }
  0x1f   :  { %p283_p1 = pnand %p282_p0, %p276_p11 }
  0x21   :  { %286 = shalt.err (!%p283_p1)
}
  0x22   :  { %s319_s0 = smov 64   ;;  %s320_s9 = smov 4  }
  0x23   :  { %34 = dma.hbm_to_vmem [thread:$0]  %s388_s1, 1024, %s29_s27, [#allocation6], %s319_s0, %s319_s0, %s320_s9  }
  0x24   :  { %309 = dma.done.wait [#allocation3], 384  }
  0x25   :  { %310 = vsyncadd [#allocation3], 4294966912 }
  0x26   :  { %311 = dma.done.wait [#allocation6], 1024  }
  0x27   :  { %312 = vsyncadd [#allocation6], 4294966272  ;;  %v235_v0 = vld [vmem:[#allocation5] sm:$0xff]   ;;  %v236_v1 = vld [vmem:[#allocation5 + $0x8] sm:$0xff]   ;;  %s321_s13 = smov [#allocation7]  }
  0x28   :  { %208 = vmatprep.subr.bf16.mxu0 %v235_v0  ;;  %v237_v2 = vld [vmem:[#allocation5 + $0x10] sm:$0xff]   ;;  %v238_v3 = vld [vmem:[#allocation5 + $0x18] sm:$0xff]   ;;  %v44_v4 = vld [vmem:[#allocation2] sm:$0xff]  ;;  %s176_s14 = sshll.u32 %s321_s13, 4  ;;  %s177_s14 = int_to_ptr.vmem [resolvable:$true] %s176_s14 }
  0x29   :  { %209 = vmatpush3.bf16.msra.mxu0 %v235_v0  ;;  %v45_v5 = vld [vmem:[#allocation2 + $0x8] sm:$0xff]  ;;  %v239_v7 = vld [vmem:[#allocation5 + $0x20] sm:$0xff]   ;;  %v240_v8 = vld [vmem:[#allocation5 + $0x28] sm:$0xff]   ;;  %s287_s15 = scalar_lea.vmem %s177_s14, 384  ;;  %p292_p3 = scmp.lt.s32.totalorder %s177_s14, %s177_s14 }
  0x2a   :  { %210 = vmatprep.subr.bf16.mxu0 %v236_v1  ;;  %v47_v6 = vpack.c.bf16 %v45_v5, %v44_v4  ;;  %v241_v9 = vld [vmem:[#allocation5 + $0x30] sm:$0xff]   ;;  %v242_v10 = vld [vmem:[#allocation5 + $0x38] sm:$0xff]   ;;  %v189_v13 = vld [vmem:[%s389_s2] ss:$0 sm:$0xff]  ;;  %p288_p2 = scmp.ne.s32.totalorder %s177_s14, %s287_s15  ;;  %p293_p4 = scmp.lt.s32.totalorder %s287_s15, %s287_s15 }
  0x2b   :  { %v46_v11 = vld [vmem:[#allocation2 + $0x10] sm:$0xff] }
  0x2c   :  { %224 = vmatprep.mubr.bf16.mxu0 %v47_v6  ;;  %v48_v12 = vpack.c.bf16 %v46_v11, %v46_v11  ;;  %p294_p5 = por %p293_p4, %p292_p3 }
  0x2d   :  { %211 = vmatpush3.bf16.msra.mxu0 %v236_v1 }
  0x2e   :  { %212 = vmatprep.subr.bf16.mxu0 %v237_v2  ;;  %p295_p6 = pnand %p294_p5, %p288_p2 }
  0x31   :  { %213 = vmatpush3.bf16.msra.mxu0 %v237_v2 }
  0x32   :  { %214 = vmatprep.subr.bf16.mxu0 %v238_v3 }
  0x35   :  { %215 = vmatpush3.bf16.msra.mxu0 %v238_v3 }
  0x36   :  { %216 = vmatprep.subr.bf16.mxu0 %v239_v7 }
  0x39   :  { %217 = vmatpush3.bf16.msra.mxu0 %v239_v7 }
  0x3a   :  { %218 = vmatprep.subr.bf16.mxu0 %v240_v8 }
  0x3d   :  { %219 = vmatpush3.bf16.msra.mxu0 %v240_v8 }
  0x3e   :  { %220 = vmatprep.subr.bf16.mxu0 %v241_v9 }
  0x41   :  { %221 = vmatpush3.bf16.msra.mxu0 %v241_v9 }
  0x42   :  { %222 = vmatprep.subr.bf16.mxu0 %v242_v10 }
  0x45   :  { %223 = vmatpush3.bf16.msra.mxu0 %v242_v10 }
  0x48   :  { %225 = vmatmul.mubr.bf16.vlgmr.msra.gmra.mrb[0].mxu0 %v48_v12 }
 0x11b   :  { %v226_v14 = vpop.f32.mrb[0].mxu0 }
 0x11c   :  { %v163_v15 = vadd.f32 %v226_v14, %v189_v13  ;;  %v154_v16 = vpop.f32.mrb[1].mxu0 }
 0x11d   :  { %v155_v17 = vadd.f32 %v189_v13, %v154_v16  ;;  %v227_v18 = vpop.f32.mrb[2].mxu0 }
 0x11e   :  { %170 = vst [vmem:[#allocation7 + $0x10] sm:$0xff] %v163_v15  ;;  %v157_v19 = vpop.f32.mrb[3].mxu0 }
 0x11f   :  { %168 = vst [vmem:[#allocation7] sm:$0xff] %v155_v17  ;;  %v158_v20 = vadd.f32 %v189_v13, %v157_v19 }
 0x121   :  { %169 = vst [vmem:[#allocation7 + $0x8] sm:$0xff] %v158_v20 }
 0x122   :  { %298 = shalt.err (!%p295_p6)
}
 0x123   :  { %s299_s17 = scalar_lea.hbm %s390_s3, 384 }
 0x124   :  { %p300_p7 = scmp.ne.s32.totalorder %s390_s3, %s299_s17  ;;  %p303_p8 = scmp.lt.u32.totalorder %s299_s17, %s390_s3 }
 0x126   :  { %p305_p9 = pnand %p303_p8, %p300_p7 }
 0x128   :  { %308 = shalt.err (!%p305_p9)
}
 0x129   :  { %182 = dma.vmem_to_hbm [thread:$0]  %s177_s14, 384, %s390_s3, [#allocation4], %s316_s22, %s316_s22, %s317_s23  }
 0x12a   :  { %313 = dma.done.wait [#allocation4], 384  }
 0x12b   :  { %314 = vsyncadd [#allocation4], 4294966912 }
 0x12c   :  { %186 = vsyncpa [#allocation3], 1 }
 0x12d   :  { %187 = vsyncpa [#allocation6], 1 }
 0x12e   :  { %188 = vsyncpa [#allocation4], 1 }

// kernel: tpu_custom_call.1
= control target key start
LH: loop header
LB: loop body
LE: loop exit
PB: predicated region body
PF: predicated region fallthrough
CT: control target
= control target key end

     0   :  { %8 = vsyncpa [#allocation3], 0  ;;  %s387_s0 = inlined_call_operand.hbm [shape: f32[20,128], index: 0, kind: input, shape index: {}]   ;;  %s388_s1 = inlined_call_operand.hbm [shape: bf16[1,128,128], index: 1, kind: input, shape index: {}]   ;;  %s389_s2 = inlined_call_operand.vmem [shape: f32[1,1,128], index: 2, kind: input, shape index: {}]   ;;  %s390_s3 = inlined_call_operand.hbm [shape: f32[20,128], index: 3, kind: output, shape index: {}]  }
   0x1   :  { %9 = vsyncpa [#allocation6], 0 }
   0x2   :  { %10 = vsyncpa [#allocation4], 0  ;;  %s315_s12 = smov [#allocation2]   ;;  %s243_s16 = scalar_lea.hbm %s387_s0, 384 }
   0x3   :  { %s16_s13 = sshll.u32 %s315_s12, 4  ;;  %p244_p0 = scmp.ne.s32.totalorder %s387_s0, %s243_s16  ;;  %s17_s13 = int_to_ptr.vmem [resolvable:$true] %s16_s13 }
   0x4   :  { %p247_p1 = scmp.lt.u32.totalorder %s243_s16, %s387_s0 }
   0x6   :  { %p249_p2 = pnand %p247_p1, %p244_p0 }
   0x8   :  { %252 = shalt.err (!%p249_p2)
}
   0x9   :  { %s253_s21 = scalar_lea.vmem %s17_s13, 384  ;;  %p258_p4 = scmp.lt.s32.totalorder %s17_s13, %s17_s13 }
   0xa   :  { %p254_p3 = scmp.ne.s32.totalorder %s17_s13, %s253_s21  ;;  %p259_p5 = scmp.lt.s32.totalorder %s253_s21, %s253_s21 }
   0xc   :  { %p260_p6 = por %p259_p5, %p258_p4 }
   0xe   :  { %p261_p7 = pnand %p260_p6, %p254_p3 }
  0x10   :  { %264 = shalt.err (!%p261_p7)
}
  0x11   :  { %s316_s22 = smov 128   ;;  %s317_s23 = smov 8  }
  0x12   :  { %22 = dma.hbm_to_vmem [thread:$0]  %s387_s0, 384, %s17_s13, [#allocation3], %s316_s22, %s316_s22, %s317_s23  }
  0x13   :  { %s318_s26 = smov [#allocation5]   ;;  %s265_s30 = scalar_lea.hbm %s388_s1, 1024 }
  0x14   :  { %s28_s27 = sshll.u32 %s318_s26, 4  ;;  %p266_p8 = scmp.ne.s32.totalorder %s388_s1, %s265_s30  ;;  %s29_s27 = int_to_ptr.vmem [resolvable:$true] %s28_s27 }
  0x15   :  { %p269_p9 = scmp.lt.u32.totalorder %s265_s30, %s388_s1 }
  0x17   :  { %p271_p10 = pnand %p269_p9, %p266_p8 }
  0x19   :  { %274 = shalt.err (!%p271_p10)
}
  0x1a   :  { %s275_s8 = scalar_lea.vmem %s29_s27, 1024  ;;  %p280_p12 = scmp.lt.s32.totalorder %s29_s27, %s29_s27 }
  0x1b   :  { %p276_p11 = scmp.ne.s32.totalorder %s29_s27, %s275_s8  ;;  %p281_p13 = scmp.lt.s32.totalorder %s275_s8, %s275_s8 }
  0x1d   :  { %p282_p0 = por %p281_p13, %p280_p12 }
  0x1f   :  { %p283_p1 = pnand %p282_p0, %p276_p11 }
  0x21   :  { %286 = shalt.err (!%p283_p1)
}
  0x22   :  { %s319_s0 = smov 64   ;;  %s320_s9 = smov 4  }
  0x23   :  { %34 = dma.hbm_to_vmem [thread:$0]  %s388_s1, 1024, %s29_s27, [#allocation6], %s319_s0, %s319_s0, %s320_s9  }
  0x24   :  { %309 = dma.done.wait [#allocation3], 384  }
  0x25   :  { %310 = vsyncadd [#allocation3], 4294966912 }
  0x26   :  { %311 = dma.done.wait [#allocation6], 1024  }
  0x27   :  { %312 = vsyncadd [#allocation6], 4294966272  ;;  %v235_v0 = vld [vmem:[#allocation5] sm:$0xff]   ;;  %v236_v1 = vld [vmem:[#allocation5 + $0x8] sm:$0xff]   ;;  %s321_s13 = smov [#allocation7]  }
  0x28   :  { %208 = vmatprep.subr.bf16.mxu0 %v235_v0  ;;  %v237_v2 = vld [vmem:[#allocation5 + $0x10] sm:$0xff]   ;;  %v238_v3 = vld [vmem:[#allocation5 + $0x18] sm:$0xff]   ;;  %v44_v4 = vld [vmem:[#allocation2] sm:$0xff]  ;;  %s176_s14 = sshll.u32 %s321_s13, 4  ;;  %s177_s14 = int_to_ptr.vmem [resolvable:$true] %s176_s14 }
  0x29   :  { %209 = vmatpush3.bf16.msra.mxu0 %v235_v0  ;;  %v45_v5 = vld [vmem:[#allocation2 + $0x8] sm:$0xff]  ;;  %v239_v7 = vld [vmem:[#allocation5 + $0x20] sm:$0xff]   ;;  %v240_v8 = vld [vmem:[#allocation5 + $0x28] sm:$0xff]   ;;  %s287_s15 = scalar_lea.vmem %s177_s14, 384  ;;  %p292_p3 = scmp.lt.s32.totalorder %s177_s14, %s177_s14 }
  0x2a   :  { %210 = vmatprep.subr.bf16.mxu0 %v236_v1  ;;  %v47_v6 = vpack.c.bf16 %v45_v5, %v44_v4  ;;  %v241_v9 = vld [vmem:[#allocation5 + $0x30] sm:$0xff]   ;;  %v242_v10 = vld [vmem:[#allocation5 + $0x38] sm:$0xff]   ;;  %v189_v13 = vld [vmem:[%s389_s2] ss:$0 sm:$0xff]  ;;  %p288_p2 = scmp.ne.s32.totalorder %s177_s14, %s287_s15  ;;  %p293_p4 = scmp.lt.s32.totalorder %s287_s15, %s287_s15 }
  0x2b   :  { %v46_v11 = vld [vmem:[#allocation2 + $0x10] sm:$0xff] }
  0x2c   :  { %224 = vmatprep.mubr.bf16.mxu0 %v47_v6  ;;  %v48_v12 = vpack.c.bf16 %v46_v11, %v46_v11  ;;  %p294_p5 = por %p293_p4, %p292_p3 }
  0x2d   :  { %211 = vmatpush3.bf16.msra.mxu0 %v236_v1 }
  0x2e   :  { %212 = vmatprep.subr.bf16.mxu0 %v237_v2  ;;  %p295_p6 = pnand %p294_p5, %p288_p2 }
  0x31   :  { %213 = vmatpush3.bf16.msra.mxu0 %v237_v2 }
  0x32   :  { %214 = vmatprep.subr.bf16.mxu0 %v238_v3 }
  0x35   :  { %215 = vmatpush3.bf16.msra.mxu0 %v238_v3 }
  0x36   :  { %216 = vmatprep.subr.bf16.mxu0 %v239_v7 }
  0x39   :  { %217 = vmatpush3.bf16.msra.mxu0 %v239_v7 }
  0x3a   :  { %218 = vmatprep.subr.bf16.mxu0 %v240_v8 }
  0x3d   :  { %219 = vmatpush3.bf16.msra.mxu0 %v240_v8 }
  0x3e   :  { %220 = vmatprep.subr.bf16.mxu0 %v241_v9 }
  0x41   :  { %221 = vmatpush3.bf16.msra.mxu0 %v241_v9 }
  0x42   :  { %222 = vmatprep.subr.bf16.mxu0 %v242_v10 }
  0x45   :  { %223 = vmatpush3.bf16.msra.mxu0 %v242_v10 }
  0x48   :  { %225 = vmatmul.mubr.bf16.vlgmr.msra.gmra.mrb[0].mxu0 %v48_v12 }
 0x11b   :  { %v226_v14 = vpop.f32.mrb[0].mxu0 }
 0x11c   :  { %v163_v15 = vadd.f32 %v226_v14, %v189_v13  ;;  %v154_v16 = vpop.f32.mrb[1].mxu0 }
 0x11d   :  { %v155_v17 = vadd.f32 %v189_v13, %v154_v16  ;;  %v227_v18 = vpop.f32.mrb[2].mxu0 }
 0x11e   :  { %170 = vst [vmem:[#allocation7 + $0x10] sm:$0xff] %v163_v15  ;;  %v157_v19 = vpop.f32.mrb[3].mxu0 }
 0x11f   :  { %168 = vst [vmem:[#allocation7] sm:$0xff] %v155_v17  ;;  %v158_v20 = vadd.f32 %v189_v13, %v157_v19 }
 0x121   :  { %169 = vst [vmem:[#allocation7 + $0x8] sm:$0xff] %v158_v20 }
 0x122   :  { %298 = shalt.err (!%p295_p6)
}
 0x123   :  { %s299_s17 = scalar_lea.hbm %s390_s3, 384 }
 0x124   :  { %p300_p7 = scmp.ne.s32.totalorder %s390_s3, %s299_s17  ;;  %p303_p8 = scmp.lt.u32.totalorder %s299_s17, %s390_s3 }
 0x126   :  { %p305_p9 = pnand %p303_p8, %p300_p7 }
 0x128   :  { %308 = shalt.err (!%p305_p9)
}
 0x129   :  { %182 = dma.vmem_to_hbm [thread:$0]  %s177_s14, 384, %s390_s3, [#allocation4], %s316_s22, %s316_s22, %s317_s23  }
 0x12a   :  { %313 = dma.done.wait [#allocation4], 384  }
 0x12b   :  { %314 = vsyncadd [#allocation4], 4294966912 }
 0x12c   :  { %186 = vsyncpa [#allocation3], 1 }
 0x12d   :  { %187 = vsyncpa [#allocation6], 1 }
 0x12e   :  { %188 = vsyncpa [#allocation4], 1 }

</bundles_post_ra>
